<compile_context>
chip_gen: v7x
topology: tpu7x:2x2x1
jax: 0.10.0
libtpu: 0.0.40
codegen_flags: <defaults>
</compile_context>

<pallas_src>
import numpy as np
import jax
import jax.numpy as jnp
from jax.experimental import pallas as pl
from jax.experimental.pallas import tpu as pltpu


# ----------------------- host-side (static) helpers --------------------------
def _interp_matrix_1d(n_in, n_out, mode):
    """(n_out, n_in) matrix reproducing torch.nn.functional.interpolate 1-D."""
    m = np.zeros((n_out, n_in), dtype=np.float32)
    dst = np.arange(n_out)
    scale = n_in / n_out
    if mode == "nearest":
        # PyTorch 'nearest': src = floor(dst * in/out), clamped.
        src = np.minimum(np.floor(dst * scale), n_in - 1).astype(np.int64)
        m[dst, src] = 1.0
    elif mode in ("bilinear", "linear"):
        # align_corners=False (PyTorch default): src = (dst+0.5)*scale - 0.5
        src = np.maximum((dst + 0.5) * scale - 0.5, 0.0)
        i0 = np.minimum(np.floor(src).astype(np.int64), n_in - 1)
        i1 = np.minimum(i0 + 1, n_in - 1)
        w1 = (src - i0).astype(np.float32)
        np.add.at(m, (dst, i0), 1.0 - w1)
        np.add.at(m, (dst, i1), w1)
    else:
        # TODO(synk): bicubic / area / trilinear modes not implemented.
        raise NotImplementedError(f"interpolation mode {mode!r}")
    return m


def _lane_split(l_out):
    """Split the output lane axis into >=2 lane-dense (128-mult) slabs if possible
    (keeps both v7x TensorCores busy); otherwise one full-width block."""
    for parts in (2, 4, 8):
        if l_out % parts == 0 and (l_out // parts) % 128 == 0:
            return parts, l_out // parts
    return 1, l_out


# --------------------------------- kernel ------------------------------------
def _interp_kernel(x_ref, kt_ref, o_ref):
    # x: (N, Hin*Win), kt: (Hin*Win, tn), o: (N, tn)  -- one MXU matmul.
    o_ref[...] = jnp.dot(
        x_ref[...], kt_ref[...], preferred_element_type=jnp.float32
    ).astype(o_ref.dtype)


# -------------------------------- wrapper -------------------------------------
def interpolate(x, size, mode):
    """Equivalent of Interpolate(size, mode).forward(x) for NCHW inputs."""
    b, c, h_in, w_in = x.shape
    if isinstance(size, int):
        h_out = w_out = size
    else:
        h_out, w_out = size

    rh = _interp_matrix_1d(h_in, h_out, mode)      # (Hout, Hin)
    rw = _interp_matrix_1d(w_in, w_out, mode)      # (Wout, Win)
    # out[n, ho*Wo+wo] = sum_{hi,wi} Rh[ho,hi] * Rw[wo,wi] * x[n, hi*Wi+wi]
    kt_np = np.kron(rh, rw).T                      # (Hin*Win, Hout*Wout)

    n = b * c
    l_in = h_in * w_in
    l_out = h_out * w_out
    # TODO(synk): for very large spatial sizes the Kronecker matrix is too big;
    # switch to a separable (row-matmul then column-matmul) kernel there.
    assert kt_np.size * 4 <= 16 * 1024 * 1024, "interpolation matrix too large"

    kt = jnp.asarray(kt_np)
    xf = x.reshape(n, l_in)                        # free view: lanes = flat HW
    parts, tn = _lane_split(l_out)

    out_flat = pl.pallas_call(
        _interp_kernel,
        grid=(parts,),
        in_specs=[
            pl.BlockSpec((n, l_in), lambda g: (0, 0)),      # whole activation
            pl.BlockSpec((l_in, tn), lambda g: (0, g)),     # column slab of K^T
        ],
        out_specs=pl.BlockSpec((n, tn), lambda g: (0, g)),  # lane-dense output
        out_shape=jax.ShapeDtypeStruct((n, l_out), x.dtype),
        compiler_params=pltpu.CompilerParams(
            dimension_semantics=("parallel",)),
    )(xf, kt)
    return out_flat.reshape(b, c, h_out, w_out)


def _numpy_reference(x, size, mode):
    b, c, h_in, w_in = x.shape
    h_out, w_out = size
    rh = _interp_matrix_1d(h_in, h_out, mode)
    rw = _interp_matrix_1d(w_in, w_out, mode)
    xf = np.asarray(x, dtype=np.float32).reshape(b * c, h_in * w_in)
    out = xf @ np.kron(rh, rw).T
    return out.reshape(b, c, h_out, w_out)


# ---------------------------------- main --------------------------------------
if __name__ == "__main__":
    key = jax.random.PRNGKey(0)
    b, c, h, w = 2, 4, 16, 16
    size = (32, 32)
    x = jax.random.normal(key, (b, c, h, w), dtype=jnp.float32)

    # bilinear (align_corners=False)
    y_bil = jax.block_until_ready(interpolate(x, size, "bilinear"))
    assert y_bil.shape == (b, c, *size)
    assert bool(jnp.all(jnp.isfinite(y_bil)))
    ref_bil = _numpy_reference(x, size, "bilinear")
    assert np.allclose(np.asarray(y_bil), ref_bil, rtol=2e-2, atol=5e-2)

    # nearest
    y_nn = jax.block_until_ready(interpolate(x, size, "nearest"))
    assert y_nn.shape == (b, c, *size)
    ref_nn = _numpy_reference(x, size, "nearest")
    assert np.allclose(np.asarray(y_nn), ref_nn, rtol=2e-2, atol=5e-2)
    # exact-2x nearest upsample: out[2i, 2j] ~= in[i, j]
    assert np.allclose(np.asarray(y_nn)[:, :, ::2, ::2], np.asarray(x),
                       rtol=2e-2, atol=5e-2)

    print("KERNEL_OK")
</pallas_src>

<mosaic_0001>
module attributes {stable_mosaic.version = 11 : i64} {
  func.func @_interp_kernel(%arg0: i32, %arg1: memref<8x256xf32, #tpu.memory_space<vmem>>, %arg2: memref<256x512xf32, #tpu.memory_space<vmem>>, %arg3: memref<8x512xf32, #tpu.memory_space<vmem>>) attributes {dimension_semantics = [#tpu.dimension_semantics<parallel>], iteration_bounds = array<i64: 2>, scalar_prefetch = 0 : i64, scratch_operands = 0 : i64, tpu.core_type = #tpu.core_type<tc>, window_params = [{pipeline_mode = #tpu.pipeline_mode<synchronous>, transform_indices = @transform_0, window_bounds = array<i64: 8, 256>}, {transform_indices = @transform_1, window_bounds = array<i64: 256, 512>}, {transform_indices = @transform_2, window_bounds = array<i64: 8, 512>}]} {
    %c0 = arith.constant 0 : index
    %c0_0 = arith.constant 0 : index
    %0 = vector.load %arg1[%c0, %c0_0] : memref<8x256xf32, #tpu.memory_space<vmem>>, vector<8x256xf32>
    %c0_1 = arith.constant 0 : index
    %c0_2 = arith.constant 0 : index
    %1 = vector.load %arg2[%c0_1, %c0_2] : memref<256x512xf32, #tpu.memory_space<vmem>>, vector<256x512xf32>
    %cst = arith.constant dense<0.000000e+00> : vector<8x512xf32>
    %2 = tpu.matmul %0, %1, %cst {dimension_numbers = #tpu.dot_dimension_numbers<[1], [0], [0], [1], [0, 0, 1, 1], [], []>} : vector<8x256xf32>, vector<256x512xf32>, vector<8x512xf32> -> vector<8x512xf32>
    %c0_3 = arith.constant 0 : index
    %c0_4 = arith.constant 0 : index
    %3 = vector.load %arg3[%c0_3, %c0_4] : memref<8x512xf32, #tpu.memory_space<vmem>>, vector<8x512xf32>
    tpu.vector_store %arg3[%c0_3, %c0_4], %2 {strides = array<i32>} : memref<8x512xf32, #tpu.memory_space<vmem>>, vector<8x512xf32>,
    return
  }
  func.func @transform_0(%arg0: i32) -> (i32, i32) {
    %c0_i32 = arith.constant 0 : i32
    %c0_i32_0 = arith.constant 0 : i32
    %c0_i32_1 = arith.constant 0 : i32
    return %c0_i32, %c0_i32_0 : i32, i32
  }
  func.func @transform_1(%arg0: i32) -> (i32, i32) {
    %c0_i32 = arith.constant 0 : i32
    %c0_i32_0 = arith.constant 0 : i32
    return %c0_i32, %arg0 : i32, i32
  }
  func.func @transform_2(%arg0: i32) -> (i32, i32) {
    %c0_i32 = arith.constant 0 : i32
    %c0_i32_0 = arith.constant 0 : i32
    return %c0_i32, %arg0 : i32, i32
  }
}

</mosaic_0001>

<bundles_post_ra>
// kernel: tpu_custom_call.1
= control target key start
LH: loop header
LB: loop body
LE: loop exit
PB: predicated region body
PF: predicated region fallthrough
CT: control target
= control target key end

     0   :  { %7 = vsyncpa [#allocation3], 0  ;;  %s1234_s0 = inlined_call_operand.hbm [shape: f32[8,256], index: 0, kind: input, shape index: {}]   ;;  %s1235_s1 = inlined_call_operand.hbm [shape: f32[256,1024], index: 1, kind: input, shape index: {}]   ;;  %s1236_s2 = inlined_call_operand.hbm [shape: f32[8,1024], index: 2, kind: output, shape index: {}]  }
   0x1   :  { %8 = vsyncpa [#allocation6], 0 }
   0x2   :  { %10 = vsyncpa [#allocation6 + $0x1], 0 }
   0x3   :  { %11 = vsyncpa [#allocation4], 0 }
   0x4   :  { %13 = vsyncpa [#allocation4 + $0x1], 0  ;;  %s907_s9 = smov 0   ;;  %s909_s10 = smov 0  }
   0x5   :  { %s911_s11 = smov 0   ;;  %s913_s12 = smov 0  }
   0x6 LB: > { %s928_s13 = sadd.s32 4294967295, %s884_s12   ;;  %s550_s14 = sadd.s32 4294967294, %s884_s12   ;;  %s884_s12 = sphi %s913_s12, %s1261_s12   ;;  %s880_s11 = sphi %s911_s11, %s1260_s11   ;;  %s876_s10 = sphi %s909_s10, %s1259_s10   ;;  %s872_s9 = sphi %s907_s9, %s1258_s9  }
   0x7   : > { %s932_s15 = sadd.s32 1, %s884_s12   ;;  %s47_s16 = sadd.s32 1, %s880_s11 }
   0x8   : > { %s44_s17 = ssub.s32 %s884_s12, %s932_s15  ;;  %p54_p0 = scmp.ne.s32.totalorder %s880_s11, %s876_s10 }
   0x9   : > { %p45_p1 = scmp.eq.s32.totalorder %s44_s17, 0  ;;  %p55_p2 = scmp.eq.s32.totalorder %s884_s12, 0 }
   0xa   : > { %p60_p3 = scmp.ne.s32.totalorder %s876_s10, %s872_s9  ;;  %p1237_p4 = scmp.eq.s32.totalorder %s928_s13, 0 }
   0xb   : > { %s944_s18 = scalar_select %p45_p1, %s880_s11, %s47_s16  }
   0xc   : > { %p946_p5 = por %p55_p2, %p54_p0  ;;  %p952_p6 = por %p1237_p4, %p60_p3 }
   0xd   : > { %p84_p7 = scmp.eq.s32.totalorder %s928_s13, 1  ;;  %p90_p8 = scmp.eq.s32.totalorder %s550_s14, 1 }
   0xe   : > { %s1243_s20 = scalar_select %p952_p6, 1, 0 }
   0xf   : > { %p551_p9 = scmp.ge.s32.totalorder %s884_s12, 1  ;;  %p97_p10 = scmp.lt.s32.totalorder %s884_s12, 3 }
  0x10   : > { %p959_p11 = por %p84_p7, %p54_p0  ;;  %p963_p12 = por %p90_p8, %p60_p3 }
  0x11   : > { %p967_p13 = pnand %p551_p9, %p97_p10  ;;  %s886_s24 = smov [#allocation2]  }
  0x12   : > { %s1244_s21 = scalar_select %p959_p11, 1, 0 }
  0x13   : > { %s1245_s22 = scalar_select %p963_p12, 1, 0 }
  0x14   : > { %s1246_s23 = scalar_select %p967_p13, 1, 0 }
  0x15   : > { %p704_p2 = pneg %p967_p13  ;;  %s110_s25 = sshll.u32 %s886_s24, 4  ;;  %s111_s25 = int_to_ptr.vmem [resolvable:$true] %s110_s25 }
  0x16   : > { %p717_p4 = scmp.lt.s32.totalorder %s884_s12, 2  ;;  %p1247_p0 = scmp.eq.s32.totalorder %s928_s13, 0 }
  0x17   : > { %s121_s27 = sand.u32 1, %s880_s11   ;;  %s756_s4 = scalar_lea.hbm %s1234_s0, 256 }
  0x18   : > { %p977_p7 = pnand %p704_p2, %p1247_p0  ;;  %p984_p3 = pnand %p717_p4, %p946_p5 }
  0x19   : > { %s554_s29 = sshll.u32 %s121_s27, 10  ;;  %p757_p8 = scmp.ne.s32.totalorder %s1234_s0, %s756_s4 }
  0x1a   : > { %s1249_s28 = scalar_select %p984_p3, 1, 0 }
  0x1b   : > { %p758_p9 = pneg %p977_p7  ;;  %p763_p4 = scmp.lt.u32.totalorder %s756_s4, %s1234_s0 }
  0x1d   : > { %p759_p10 = pnand %p758_p9, %p757_p8 }
  0x1f   : > { %p760_p2 = pneg %p759_p10 }
  0x21   : > { %p765_p5 = pnand %p763_p4, %p760_p2 }
  0x23   : > { %768 = shalt.err (!%p765_p5)
}
  0x24   : > { %s769_s14 = scalar_lea.vmem %s111_s25, 256  ;;  %p777_p11 = scmp.lt.s32.totalorder %s111_s25, %s111_s25 }
  0x25   : > { %p770_p0 = scmp.ne.s32.totalorder %s111_s25, %s769_s14  ;;  %p778_p6 = scmp.lt.s32.totalorder %s769_s14, %s769_s14 }
  0x27   : > { %p772_p1 = pnand %p770_p0, %p758_p9  ;;  %p779_p13 = por %p778_p6, %p777_p11 }
  0x29   : > { %p773_p12 = pneg %p772_p1 }
  0x2b   : > { %p780_p3 = pnand %p779_p13, %p773_p12 }
  0x2d   : > { %783 = shalt.err (!%p780_p3)
}
  0x2e   : > { %707 = dma.hbm_to_vmem [thread:$0]  (!%p977_p7), %s1234_s0, 256, %s111_s25, [#allocation3]  }
  0x2f   : > { %s566_s19 = sshll.u32 %s884_s12, 9  ;;  %s125_s24 = scalar_lea.vmem [#allocation5], %s554_s29 }
  0x30   : > { %s132_s30 = sshll.u32 %s125_s24, 4  ;;  %s1008_s5 = scalar_lea.hbm %s1235_s1, %s566_s19  ;;  %s1010_s30 = int_to_ptr.vmem [resolvable:$true] %s132_s30 }
  0x31   : > { %s1012_s26 = scalar_lea.sflag [#allocation6], %s121_s27  ;;  %s784_s6 = scalar_lea.hbm %s1008_s5, 16384 }
  0x32   : > { %p785_p6 = scmp.ne.s32.totalorder %s1008_s5, %s784_s6  ;;  %p1250_p11 = scmp.ne.s32.totalorder %s1249_s28, 0 }
  0x33   : > { %s789_s7 = scalar_lea.hbm %s1235_s1, 32768  ;;  %p790_p7 = scmp.lt.u32.totalorder %s1008_s5, %s1235_s1 }
  0x34   : > { %p786_p12 = pneg %p1250_p11  ;;  %p791_p3 = scmp.lt.u32.totalorder %s789_s7, %s784_s6 }
  0x35   : > { %p793_p9 = scmp.lt.u32.totalorder %s784_s6, %s1008_s5 }
  0x36   : > { %p787_p13 = pnand %p786_p12, %p785_p6  ;;  %p792_p8 = por %p791_p3, %p790_p7 }
  0x38   : > { %p788_p1 = pneg %p787_p13  ;;  %p794_p10 = por %p793_p9, %p792_p8 }
  0x3a   : > { %p795_p2 = pnand %p794_p10, %p788_p1 }
  0x3c   : > { %798 = shalt.err (!%p795_p2)
}
  0x3d   : > { %s799_s27 = scalar_lea.vmem %s1010_s30, 16384  ;;  %s887_s16 = smov [#allocation5]  }
  0x3e   : > { %p800_p4 = scmp.ne.s32.totalorder %s1010_s30, %s799_s27  ;;  %s804_s17 = sshll.u32 %s887_s16, 4  ;;  %s805_s17 = int_to_ptr.vmem [resolvable:$false] %s804_s17 }
  0x3f   : > { %s806_s19 = scalar_lea.vmem %s805_s17, 32768  ;;  %p807_p6 = scmp.lt.s32.totalorder %s1010_s30, %s805_s17 }
  0x40   : > { %p802_p5 = pnand %p800_p4, %p786_p12  ;;  %p808_p13 = scmp.lt.s32.totalorder %s806_s19, %s799_s27 }
  0x42   : > { %p803_p0 = pneg %p802_p5  ;;  %p809_p7 = por %p808_p13, %p807_p6 }
  0x44   : > { %p810_p3 = pnand %p809_p7, %p803_p0 }
  0x46   : > { %813 = shalt.err (!%p810_p3)
}
  0x47   : > { %s888_s24 = smov 1024   ;;  %s889_s3 = smov 512  }
  0x48   : > { %s890_s4 = smov 32   ;;  %p1251_p12 = scmp.ne.s32.totalorder %s1246_s23, 0 }
  0x49   : > { %711 = dma.hbm_to_vmem [thread:$0]  (!%p1250_p11), %s1008_s5, 16384, %s1010_s30, %s1012_s26, %s888_s24, %s889_s3, %s890_s4  }
  0x4a   : > { %144 = sbr.rel (%p1251_p12) target bundleno = 382 (0x17e), region = 28  ;;  %p1252_p1 = scmp.eq.s32.totalorder (!%p1251_p12), %s928_s13, 0 }
  0x51   : > { %859 = dma.done.wait (%p1252_p1), [#allocation3], 256   ;;  %p1253_p8 = pmov %p1252_p1 }
  0x52   : > { %s1047_s6 = sand.u32 1, %s876_s10   ;;  %p1254_p11 = scmp.ne.s32.totalorder %s1243_s20, 0 }
  0x53   : > { %861 = vsyncadd (%p1253_p8), [#allocation3], 4294967040  ;;  %s559_s25 = sshll.u32 %s1047_s6, 10  ;;  %s151_s29 = scalar_lea.sflag [#allocation6], %s1047_s6 }
  0x54   : > { %s1051_s7 = scalar_lea.vmem [#allocation5], %s559_s25 }
  0x55   : > { %863 = dma.done.wait (%p1254_p11), %s151_s29, 16384  }
  0x56   : > { %865 = vsyncadd (%p1254_p11), %s151_s29, 4294950912  ;;  %v180_v0 = vld [vmem:[%s1051_s7 + $0x8] sm:$0xff]  ;;  %v182_v2 = vld [vmem:[%s1051_s7 + $0x18] sm:$0xff]  ;;  %s560_s20 = sshll.u32 %s1047_s6, 5  ;;  %s567_s30 = sshll.u32 %s928_s13, 9 }
  0x57   : > { %v184_v1 = vld [vmem:[%s1051_s7 + $0x28] sm:$0xff]  ;;  %v186_v4 = vld [vmem:[%s1051_s7 + $0x38] sm:$0xff]  ;;  %v179_v5 = vld [vmem:[%s1051_s7] sm:$0xff]  ;;  %s174_s23 = scalar_lea.vmem [#allocation7], %s560_s20  ;;  %s1192_s8 = scalar_lea.hbm %s1236_s2, %s567_s30 }
  0x58   : > { %v568_v3 = vpack.c.bf16 %v184_v1, %v180_v0  ;;  %v183_v6 = vld [vmem:[%s1051_s7 + $0x20] sm:$0xff]  ;;  %v632_v7 = vpack.c.bf16 %v186_v4, %v182_v2  ;;  %v181_v9 = vld [vmem:[%s1051_s7 + $0x10] sm:$0xff]  ;;  %v188_v11 = vld [vmem:[%s1051_s7 + $0x48] sm:$0xff]  ;;  %s468_s28 = sshll.u32 %s174_s23, 4  ;;  %s454_s14 = scalar_lea.sflag [#allocation4], %s1047_s6  ;;  %s1187_s28 = int_to_ptr.vmem [resolvable:$true] %s468_s28 }
  0x59   : > { %v570_v8 = vpack.c.bf16 %v183_v6, %v179_v5  ;;  %v185_v10 = vld [vmem:[%s1051_s7 + $0x30] sm:$0xff]  ;;  %v192_v13 = vld [vmem:[%s1051_s7 + $0x68] sm:$0xff]  ;;  %v190_v14 = vld [vmem:[%s1051_s7 + $0x58] sm:$0xff]  ;;  %s814_s13 = scalar_lea.vmem %s1187_s28, 512  ;;  %p1255_p10 = scmp.ne.s32.totalorder %s1244_s21, 0 }
  0x5a   : > { %569 = vmatprep.subr.bf16.mxu0 %v568_v3  ;;  %v634_v12 = vpack.c.bf16 %v185_v10, %v181_v9  ;;  %v194_v15 = vld [vmem:[%s1051_s7 + $0x78] sm:$0xff]  ;;  %633 = vmatprep.subr.bf16.mxu1 %v632_v7  ;;  %v572_v16 = vpack.c.bf16 %v192_v13, %v188_v11  ;;  %v187_v18 = vld [vmem:[%s1051_s7 + $0x40] sm:$0xff]  ;;  %v189_v20 = vld [vmem:[%s1051_s7 + $0x50] sm:$0xff]  ;;  %p815_p9 = scmp.ne.s32.totalorder %s1187_s28, %s814_s13  ;;  %s891_s27 = smov [#allocation7]  }
  0x5b   : > { %571 = vmatpush1.bf16.msra.mxu0 %v570_v8  ;;  %v636_v17 = vpack.c.bf16 %v194_v15, %v190_v14  ;;  %v191_v19 = vld [vmem:[%s1051_s7 + $0x60] sm:$0xff]  ;;  %v193_v22 = vld [vmem:[%s1051_s7 + $0x70] sm:$0xff]  ;;  %v196_v23 = vld [vmem:[%s1051_s7 + $0x88] sm:$0xff]  ;;  %s818_s16 = sshll.u32 %s891_s27, 4  ;;  %s819_s16 = int_to_ptr.vmem [resolvable:$false] %s818_s16 }
  0x5c   : > { %635 = vmatpush1.bf16.msra.mxu1 %v634_v12  ;;  %v574_v21 = vpack.c.bf16 %v191_v19, %v187_v18  ;;  %v200_v24 = vld [vmem:[%s1051_s7 + $0xa8] sm:$0xff]  ;;  %573 = vmatprep.subr.bf16.mxu0 %v572_v16  ;;  %v638_v25 = vpack.c.bf16 %v193_v22, %v189_v20  ;;  %v198_v27 = vld [vmem:[%s1051_s7 + $0x98] sm:$0xff]  ;;  %v195_v29 = vld [vmem:[%s1051_s7 + $0x80] sm:$0xff]  ;;  %p816_p2 = pnand %p815_p9, %p1255_p10  ;;  %s820_s17 = scalar_lea.vmem %s819_s16, 1024 }
  0x5d   : > { %637 = vmatprep.subr.bf16.mxu1 %v636_v17  ;;  %v576_v26 = vpack.c.bf16 %v200_v24, %v196_v23  ;;  %v202_v28 = vld [vmem:[%s1051_s7 + $0xb8] sm:$0xff]  ;;  %v199_v31 = vld [vmem:[%s1051_s7 + $0xa0] sm:$0xff]  ;;  %v197_v32 = vld [vmem:[%s1051_s7 + $0x90] sm:$0xff]  ;;  %p821_p5 = scmp.lt.s32.totalorder %s1187_s28, %s819_s16  ;;  %p822_p0 = scmp.lt.s32.totalorder %s820_s17, %s814_s13 }
  0x5e   : > { %v640_v30 = vpack.c.bf16 %v202_v28, %v198_v27  ;;  %v201_v33 = vld [vmem:[%s1051_s7 + $0xb0] sm:$0xff]  ;;  %v578_v34 = vpack.c.bf16 %v199_v31, %v195_v29  ;;  %v204_v35 = vld [vmem:[%s1051_s7 + $0xc8] sm:$0xff]  ;;  %v206_v37 = vld [vmem:[%s1051_s7 + $0xd8] sm:$0xff]  ;;  %p817_p4 = pneg %p816_p2 }
  0x5f   : > { %575 = vmatpush1.bf16.msra.mxu0 %v574_v21  ;;  %v208_v36 = vld [vmem:[%s1051_s7 + $0xe8] sm:$0xff]  ;;  %v642_v38 = vpack.c.bf16 %v201_v33, %v197_v32  ;;  %v210_v40 = vld [vmem:[%s1051_s7 + $0xf8] sm:$0xff]  ;;  %v203_v41 = vld [vmem:[%s1051_s7 + $0xc0] sm:$0xff]  ;;  %p823_p6 = por %p822_p0, %p821_p5 }
  0x60   : > { %639 = vmatpush1.bf16.msra.mxu1 %v638_v25  ;;  %577 = vmatprep.subr.bf16.mxu0 %v576_v26  ;;  %v580_v39 = vpack.c.bf16 %v208_v36, %v204_v35  ;;  %v207_v42 = vld [vmem:[%s1051_s7 + $0xe0] sm:$0xff]  ;;  %v644_v43 = vpack.c.bf16 %v210_v40, %v206_v37  ;;  %v205_v44 = vld [vmem:[%s1051_s7 + $0xd0] sm:$0xff]  ;;  %v212_v46 = vld [vmem:[%s1051_s7 + $0x108] sm:$0xff] }
  0x61   : > { %641 = vmatprep.subr.bf16.mxu1 %v640_v30  ;;  %v209_v45 = vld [vmem:[%s1051_s7 + $0xf0] sm:$0xff]  ;;  %v216_v47 = vld [vmem:[%s1051_s7 + $0x128] sm:$0xff]  ;;  %v214_v48 = vld [vmem:[%s1051_s7 + $0x118] sm:$0xff]  ;;  %v582_v50 = vpack.c.bf16 %v207_v42, %v203_v41  ;;  %p824_p13 = pnand %p823_p6, %p817_p4 }
  0x62   : > { %v218_v49 = vld [vmem:[%s1051_s7 + $0x138] sm:$0xff]  ;;  %v646_v51 = vpack.c.bf16 %v209_v45, %v205_v44  ;;  %v584_v52 = vpack.c.bf16 %v216_v47, %v212_v46  ;;  %v211_v53 = vld [vmem:[%s1051_s7 + $0x100] sm:$0xff]  ;;  %v213_v55 = vld [vmem:[%s1051_s7 + $0x110] sm:$0xff] }
  0x63   : > { %579 = vmatpush1.bf16.msra.mxu0 %v578_v34  ;;  %v215_v54 = vld [vmem:[%s1051_s7 + $0x120] sm:$0xff]  ;;  %v648_v56 = vpack.c.bf16 %v218_v49, %v214_v48  ;;  %v217_v57 = vld [vmem:[%s1051_s7 + $0x130] sm:$0xff]  ;;  %v220_v58 = vld [vmem:[%s1051_s7 + $0x148] sm:$0xff] }
  0x64   : > { %643 = vmatpush1.bf16.msra.mxu1 %v642_v38  ;;  %581 = vmatprep.subr.bf16.mxu0 %v580_v39  ;;  %v224_v59 = vld [vmem:[%s1051_s7 + $0x168] sm:$0xff]  ;;  %v222_v60 = vld [vmem:[%s1051_s7 + $0x158] sm:$0xff]  ;;  %v586_v62 = vpack.c.bf16 %v215_v54, %v211_v53  ;;  %v650_v63 = vpack.c.bf16 %v217_v57, %v213_v55  ;;  %v219_v1 = vld [vmem:[%s1051_s7 + $0x140] sm:$0xff] }
  0x65   : > { %645 = vmatprep.subr.bf16.mxu1 %v644_v43  ;;  %v226_v61 = vld [vmem:[%s1051_s7 + $0x178] sm:$0xff]  ;;  %v588_v0 = vpack.c.bf16 %v224_v59, %v220_v58  ;;  %v223_v2 = vld [vmem:[%s1051_s7 + $0x160] sm:$0xff]  ;;  %v221_v3 = vld [vmem:[%s1051_s7 + $0x150] sm:$0xff] }
  0x66   : > { %v652_v4 = vpack.c.bf16 %v226_v61, %v222_v60  ;;  %v225_v5 = vld [vmem:[%s1051_s7 + $0x170] sm:$0xff]  ;;  %v228_v6 = vld [vmem:[%s1051_s7 + $0x188] sm:$0xff]  ;;  %v230_v8 = vld [vmem:[%s1051_s7 + $0x198] sm:$0xff]  ;;  %v590_v10 = vpack.c.bf16 %v223_v2, %v219_v1 }
  0x67   : > { %583 = vmatpush1.bf16.msra.mxu0 %v582_v50  ;;  %v232_v7 = vld [vmem:[%s1051_s7 + $0x1a8] sm:$0xff]  ;;  %v234_v9 = vld [vmem:[%s1051_s7 + $0x1b8] sm:$0xff]  ;;  %v654_v11 = vpack.c.bf16 %v225_v5, %v221_v3  ;;  %v227_v13 = vld [vmem:[%s1051_s7 + $0x180] sm:$0xff] }
  0x68   : > { %647 = vmatpush1.bf16.msra.mxu1 %v646_v51  ;;  %585 = vmatprep.subr.bf16.mxu0 %v584_v52  ;;  %v592_v12 = vpack.c.bf16 %v232_v7, %v228_v6  ;;  %v231_v14 = vld [vmem:[%s1051_s7 + $0x1a0] sm:$0xff]  ;;  %v229_v15 = vld [vmem:[%s1051_s7 + $0x190] sm:$0xff]  ;;  %v656_v16 = vpack.c.bf16 %v234_v9, %v230_v8  ;;  %v236_v18 = vld [vmem:[%s1051_s7 + $0x1c8] sm:$0xff] }
  0x69   : > { %649 = vmatprep.subr.bf16.mxu1 %v648_v56  ;;  %v233_v17 = vld [vmem:[%s1051_s7 + $0x1b0] sm:$0xff]  ;;  %v240_v19 = vld [vmem:[%s1051_s7 + $0x1e8] sm:$0xff]  ;;  %v238_v20 = vld [vmem:[%s1051_s7 + $0x1d8] sm:$0xff]  ;;  %v594_v22 = vpack.c.bf16 %v231_v14, %v227_v13 }
  0x6a   : > { %v242_v21 = vld [vmem:[%s1051_s7 + $0x1f8] sm:$0xff]  ;;  %v658_v23 = vpack.c.bf16 %v233_v17, %v229_v15  ;;  %v596_v24 = vpack.c.bf16 %v240_v19, %v236_v18  ;;  %v235_v25 = vld [vmem:[%s1051_s7 + $0x1c0] sm:$0xff]  ;;  %v237_v27 = vld [vmem:[%s1051_s7 + $0x1d0] sm:$0xff] }
  0x6b   : > { %587 = vmatpush1.bf16.msra.mxu0 %v586_v62  ;;  %v239_v26 = vld [vmem:[%s1051_s7 + $0x1e0] sm:$0xff]  ;;  %v660_v28 = vpack.c.bf16 %v242_v21, %v238_v20  ;;  %v241_v29 = vld [vmem:[%s1051_s7 + $0x1f0] sm:$0xff]  ;;  %v244_v30 = vld [vmem:[%s1051_s7 + $0x208] sm:$0xff] }
  0x6c   : > { %651 = vmatpush1.bf16.msra.mxu1 %v650_v63  ;;  %589 = vmatprep.subr.bf16.mxu0 %v588_v0  ;;  %v248_v31 = vld [vmem:[%s1051_s7 + $0x228] sm:$0xff]  ;;  %v246_v32 = vld [vmem:[%s1051_s7 + $0x218] sm:$0xff]  ;;  %v598_v34 = vpack.c.bf16 %v239_v26, %v235_v25  ;;  %v662_v35 = vpack.c.bf16 %v241_v29, %v237_v27  ;;  %v243_v37 = vld [vmem:[%s1051_s7 + $0x200] sm:$0xff] }
  0x6d   : > { %653 = vmatprep.subr.bf16.mxu1 %v652_v4  ;;  %v250_v33 = vld [vmem:[%s1051_s7 + $0x238] sm:$0xff]  ;;  %v600_v36 = vpack.c.bf16 %v248_v31, %v244_v30  ;;  %v247_v38 = vld [vmem:[%s1051_s7 + $0x220] sm:$0xff]  ;;  %v245_v39 = vld [vmem:[%s1051_s7 + $0x210] sm:$0xff] }
  0x6e   : > { %v664_v40 = vpack.c.bf16 %v250_v33, %v246_v32  ;;  %v249_v41 = vld [vmem:[%s1051_s7 + $0x230] sm:$0xff]  ;;  %v252_v42 = vld [vmem:[%s1051_s7 + $0x248] sm:$0xff]  ;;  %v254_v44 = vld [vmem:[%s1051_s7 + $0x258] sm:$0xff]  ;;  %v602_v46 = vpack.c.bf16 %v247_v38, %v243_v37 }
  0x6f   : > { %591 = vmatpush1.bf16.msra.mxu0 %v590_v10  ;;  %v256_v43 = vld [vmem:[%s1051_s7 + $0x268] sm:$0xff]  ;;  %v258_v45 = vld [vmem:[%s1051_s7 + $0x278] sm:$0xff]  ;;  %v666_v47 = vpack.c.bf16 %v249_v41, %v245_v39  ;;  %v251_v49 = vld [vmem:[%s1051_s7 + $0x240] sm:$0xff] }
  0x70   : > { %655 = vmatpush1.bf16.msra.mxu1 %v654_v11  ;;  %593 = vmatprep.subr.bf16.mxu0 %v592_v12  ;;  %v604_v48 = vpack.c.bf16 %v256_v43, %v252_v42  ;;  %v255_v50 = vld [vmem:[%s1051_s7 + $0x260] sm:$0xff]  ;;  %v253_v51 = vld [vmem:[%s1051_s7 + $0x250] sm:$0xff]  ;;  %v668_v52 = vpack.c.bf16 %v258_v45, %v254_v44  ;;  %v260_v54 = vld [vmem:[%s1051_s7 + $0x288] sm:$0xff] }
  0x71   : > { %657 = vmatprep.subr.bf16.mxu1 %v656_v16  ;;  %v257_v53 = vld [vmem:[%s1051_s7 + $0x270] sm:$0xff]  ;;  %v264_v55 = vld [vmem:[%s1051_s7 + $0x2a8] sm:$0xff]  ;;  %v262_v56 = vld [vmem:[%s1051_s7 + $0x298] sm:$0xff]  ;;  %v606_v58 = vpack.c.bf16 %v255_v50, %v251_v49 }
  0x72   : > { %v266_v57 = vld [vmem:[%s1051_s7 + $0x2b8] sm:$0xff]  ;;  %v670_v59 = vpack.c.bf16 %v257_v53, %v253_v51  ;;  %v608_v60 = vpack.c.bf16 %v264_v55, %v260_v54  ;;  %v259_v61 = vld [vmem:[%s1051_s7 + $0x280] sm:$0xff]  ;;  %v261_v63 = vld [vmem:[%s1051_s7 + $0x290] sm:$0xff] }
  0x73   : > { %595 = vmatpush1.bf16.msra.mxu0 %v594_v22  ;;  %v263_v62 = vld [vmem:[%s1051_s7 + $0x2a0] sm:$0xff]  ;;  %v672_v0 = vpack.c.bf16 %v266_v57, %v262_v56  ;;  %v265_v1 = vld [vmem:[%s1051_s7 + $0x2b0] sm:$0xff]  ;;  %v268_v2 = vld [vmem:[%s1051_s7 + $0x2c8] sm:$0xff] }
  0x74   : > { %659 = vmatpush1.bf16.msra.mxu1 %v658_v23  ;;  %597 = vmatprep.subr.bf16.mxu0 %v596_v24  ;;  %v272_v3 = vld [vmem:[%s1051_s7 + $0x2e8] sm:$0xff]  ;;  %v270_v4 = vld [vmem:[%s1051_s7 + $0x2d8] sm:$0xff]  ;;  %v610_v6 = vpack.c.bf16 %v263_v62, %v259_v61  ;;  %v267_v7 = vld [vmem:[%s1051_s7 + $0x2c0] sm:$0xff]  ;;  %v674_v8 = vpack.c.bf16 %v265_v1, %v261_v63 }
  0x75   : > { %661 = vmatprep.subr.bf16.mxu1 %v660_v28  ;;  %v274_v5 = vld [vmem:[%s1051_s7 + $0x2f8] sm:$0xff]  ;;  %v612_v9 = vpack.c.bf16 %v272_v3, %v268_v2  ;;  %v271_v10 = vld [vmem:[%s1051_s7 + $0x2e0] sm:$0xff]  ;;  %v269_v11 = vld [vmem:[%s1051_s7 + $0x2d0] sm:$0xff] }
  0x76   : > { %v273_v12 = vld [vmem:[%s1051_s7 + $0x2f0] sm:$0xff]  ;;  %v676_v13 = vpack.c.bf16 %v274_v5, %v270_v4  ;;  %v276_v14 = vld [vmem:[%s1051_s7 + $0x308] sm:$0xff]  ;;  %v178_v16 = vld [vmem:[#allocation2 + $0x8] sm:$0xff]  ;;  %v614_v19 = vpack.c.bf16 %v271_v10, %v267_v7 }
  0x77   : > { %599 = vmatpush1.bf16.msra.mxu0 %v598_v34  ;;  %v280_v15 = vld [vmem:[%s1051_s7 + $0x328] sm:$0xff]  ;;  %v278_v17 = vld [vmem:[%s1051_s7 + $0x318] sm:$0xff]  ;;  %371 = vmatprep.mubr.f32.mxu0 %v178_v16  ;;  %v678_v20 = vpack.c.bf16 %v273_v12, %v269_v11  ;;  %v275_v22 = vld [vmem:[%s1051_s7 + $0x300] sm:$0xff] }
  0x78   : > { %663 = vmatpush1.bf16.msra.mxu1 %v662_v35  ;;  %601 = vmatprep.subr.bf16.mxu0 %v600_v36  ;;  %v282_v18 = vld [vmem:[%s1051_s7 + $0x338] sm:$0xff]  ;;  %v616_v21 = vpack.c.bf16 %v280_v15, %v276_v14  ;;  %v279_v23 = vld [vmem:[%s1051_s7 + $0x320] sm:$0xff]  ;;  %v277_v24 = vld [vmem:[%s1051_s7 + $0x310] sm:$0xff] }
  0x79   : > { %665 = vmatprep.subr.bf16.mxu1 %v664_v40  ;;  %442 = vmatprep.mubr.f32.mxu1 %v178_v16  ;;  %v680_v25 = vpack.c.bf16 %v282_v18, %v278_v17  ;;  %v281_v26 = vld [vmem:[%s1051_s7 + $0x330] sm:$0xff]  ;;  %v284_v27 = vld [vmem:[%s1051_s7 + $0x348] sm:$0xff]  ;;  %v286_v29 = vld [vmem:[%s1051_s7 + $0x358] sm:$0xff]  ;;  %v618_v31 = vpack.c.bf16 %v279_v23, %v275_v22 }
  0x7a   : > { %v288_v28 = vld [vmem:[%s1051_s7 + $0x368] sm:$0xff]  ;;  %v290_v30 = vld [vmem:[%s1051_s7 + $0x378] sm:$0xff]  ;;  %v682_v32 = vpack.c.bf16 %v281_v26, %v277_v24  ;;  %v283_v34 = vld [vmem:[%s1051_s7 + $0x340] sm:$0xff] }
  0x7b   : > { %603 = vmatpush1.bf16.msra.mxu0 %v602_v46  ;;  %v620_v33 = vpack.c.bf16 %v288_v28, %v284_v27  ;;  %v287_v35 = vld [vmem:[%s1051_s7 + $0x360] sm:$0xff]  ;;  %v285_v36 = vld [vmem:[%s1051_s7 + $0x350] sm:$0xff]  ;;  %v684_v37 = vpack.c.bf16 %v290_v30, %v286_v29  ;;  %v292_v39 = vld [vmem:[%s1051_s7 + $0x388] sm:$0xff] }
  0x7c   : > { %667 = vmatpush1.bf16.msra.mxu1 %v666_v47  ;;  %605 = vmatprep.subr.bf16.mxu0 %v604_v48  ;;  %v289_v38 = vld [vmem:[%s1051_s7 + $0x370] sm:$0xff]  ;;  %v296_v40 = vld [vmem:[%s1051_s7 + $0x3a8] sm:$0xff]  ;;  %v294_v41 = vld [vmem:[%s1051_s7 + $0x398] sm:$0xff]  ;;  %v622_v43 = vpack.c.bf16 %v287_v35, %v283_v34 }
  0x7d   : > { %669 = vmatprep.subr.bf16.mxu1 %v668_v52  ;;  %v298_v42 = vld [vmem:[%s1051_s7 + $0x3b8] sm:$0xff]  ;;  %v686_v44 = vpack.c.bf16 %v289_v38, %v285_v36  ;;  %v624_v45 = vpack.c.bf16 %v296_v40, %v292_v39  ;;  %v291_v46 = vld [vmem:[%s1051_s7 + $0x380] sm:$0xff]  ;;  %v293_v48 = vld [vmem:[%s1051_s7 + $0x390] sm:$0xff] }
  0x7e   : > { %v295_v47 = vld [vmem:[%s1051_s7 + $0x3a0] sm:$0xff]  ;;  %v688_v49 = vpack.c.bf16 %v298_v42, %v294_v41  ;;  %v297_v50 = vld [vmem:[%s1051_s7 + $0x3b0] sm:$0xff]  ;;  %v300_v51 = vld [vmem:[%s1051_s7 + $0x3c8] sm:$0xff] }
  0x7f   : > { %607 = vmatpush1.bf16.msra.mxu0 %v606_v58  ;;  %v304_v52 = vld [vmem:[%s1051_s7 + $0x3e8] sm:$0xff]  ;;  %v302_v53 = vld [vmem:[%s1051_s7 + $0x3d8] sm:$0xff]  ;;  %v626_v55 = vpack.c.bf16 %v295_v47, %v291_v46  ;;  %v690_v56 = vpack.c.bf16 %v297_v50, %v293_v48  ;;  %v299_v58 = vld [vmem:[%s1051_s7 + $0x3c0] sm:$0xff] }
  0x80   : > { %671 = vmatpush1.bf16.msra.mxu1 %v670_v59  ;;  %609 = vmatprep.subr.bf16.mxu0 %v608_v60  ;;  %v306_v54 = vld [vmem:[%s1051_s7 + $0x3f8] sm:$0xff]  ;;  %v628_v57 = vpack.c.bf16 %v304_v52, %v300_v51  ;;  %v303_v59 = vld [vmem:[%s1051_s7 + $0x3e0] sm:$0xff]  ;;  %v301_v61 = vld [vmem:[%s1051_s7 + $0x3d0] sm:$0xff] }
  0x81   : > { %673 = vmatprep.subr.bf16.mxu1 %v672_v0  ;;  %v692_v60 = vpack.c.bf16 %v306_v54, %v302_v53  ;;  %v305_v62 = vld [vmem:[%s1051_s7 + $0x3f0] sm:$0xff]  ;;  %v630_v63 = vpack.c.bf16 %v303_v59, %v299_v58 }
  0x82   : > { %v694_v0 = vpack.c.bf16 %v305_v62, %v301_v61  ;;  %v177_v1 = vld [vmem:[#allocation2] sm:$0xff] }
  0x83   : > { %611 = vmatpush1.bf16.msra.mxu0 %v610_v6 }
  0x84   : > { %675 = vmatpush1.bf16.msra.mxu1 %v674_v8  ;;  %613 = vmatprep.subr.bf16.mxu0 %v612_v9 }
  0x85   : > { %677 = vmatprep.subr.bf16.mxu1 %v676_v13 }
  0x87   : > { %615 = vmatpush1.bf16.msra.mxu0 %v614_v19 }
  0x88   : > { %679 = vmatpush1.bf16.msra.mxu1 %v678_v20  ;;  %617 = vmatprep.subr.bf16.mxu0 %v616_v21 }
  0x89   : > { %681 = vmatprep.subr.bf16.mxu1 %v680_v25 }
  0x8b   : > { %619 = vmatpush1.bf16.msra.mxu0 %v618_v31 }
  0x8c   : > { %683 = vmatpush1.bf16.msra.mxu1 %v682_v32  ;;  %621 = vmatprep.subr.bf16.mxu0 %v620_v33 }
  0x8d   : > { %685 = vmatprep.subr.bf16.mxu1 %v684_v37 }
  0x8f   : > { %623 = vmatpush1.bf16.msra.mxu0 %v622_v43 }
  0x90   : > { %687 = vmatpush1.bf16.msra.mxu1 %v686_v44  ;;  %625 = vmatprep.subr.bf16.mxu0 %v624_v45 }
  0x91   : > { %689 = vmatprep.subr.bf16.mxu1 %v688_v49 }
  0x93   : > { %627 = vmatpush1.bf16.msra.mxu0 %v626_v55 }
  0x94   : > { %691 = vmatpush1.bf16.msra.mxu1 %v690_v56  ;;  %629 = vmatprep.subr.bf16.mxu0 %v628_v57 }
  0x95   : > { %693 = vmatprep.subr.bf16.mxu1 %v692_v60 }
  0x97   : > { %631 = vmatpush1.bf16.msra.mxu0 %v630_v63 }
  0x98   : > { %695 = vmatpush1.bf16.msra.mxu1 %v694_v0 }
  0x9a   : > { %372 = vmatmul.mubr.f32.vlgmr.msra.gmra.mrb[0].mxu0 %v177_v1 }
  0x9b   : > { %443 = vmatmul.mubr.f32.vlgmr.msra.gmra.mrb[0].mxu1 %v177_v1 }
 0x16d   : > { %v373_v2 = vpop.f32.mrb[0].mxu0 }
 0x16e   : > { %449 = vst [vmem:[%s174_s23] sm:$0xff] %v373_v2  ;;  %v444_v3 = vpop.f32.mrb[0].mxu1  ;;  %v375_v4 = vpop.f32.mrb[1].mxu0 }
 0x16f   : > { %451 = vst [vmem:[%s174_s23 + $0x10] sm:$0xff] %v444_v3  ;;  %450 = vst [vmem:[%s174_s23 + $0x8] sm:$0xff] %v375_v4  ;;  %v446_v5 = vpop.f32.mrb[1].mxu1 }
 0x170   : > { %452 = vst [vmem:[%s174_s23 + $0x18] sm:$0xff] %v446_v5 }
 0x171   : > { %827 = shalt.err (!%p824_p13)
}
 0x172   : > { %s828_s19 = scalar_lea.hbm %s1192_s8, 512  ;;  %s832_s4 = scalar_lea.hbm %s1236_s2, 1024 }
 0x173   : > { %p829_p7 = scmp.ne.s32.totalorder %s1192_s8, %s828_s19  ;;  %p833_p1 = scmp.lt.u32.totalorder %s1192_s8, %s1236_s2 }
 0x174   : > { %p834_p8 = scmp.lt.u32.totalorder %s832_s4, %s828_s19  ;;  %p836_p9 = scmp.lt.u32.totalorder %s828_s19, %s1192_s8 }
 0x175   : > { %p830_p3 = pnand %p829_p7, %p1255_p10 }
 0x176   : > { %p835_p11 = por %p834_p8, %p833_p1 }
 0x177   : > { %p831_p12 = pneg %p830_p3 }
 0x178   : > { %p837_p2 = por %p836_p9, %p835_p11 }
 0x17a   : > { %p838_p4 = pnand %p837_p2, %p831_p12 }
 0x17c   : > { %841 = shalt.err (!%p838_p4)
}
 0x17d   : > { %702 = dma.vmem_to_hbm [thread:$0]  (%p1255_p10), %s1187_s28, 512, %s1192_s8, %s454_s14  }
 0x17e PF: > { %s480_s29 = sand.u32 1, %s872_s9   ;;  %p1256_p5 = scmp.ne.s32.totalorder %s1245_s22, 0 }
 0x17f   : > { %p1257_p0 = scmp.ge.s32.totalorder %s884_s12, 2  ;;  %s481_s7 = scalar_lea.sflag [#allocation4], %s480_s29 }
 0x181   : > { %p713_p6 = pnand %p1257_p0, %p1256_p5 }
 0x183   : > { %867 = dma.done.wait (!%p713_p6), %s481_s7, 512  }
 0x184   : > { %869 = vsyncadd (!%p713_p6), %s481_s7, 4294966784  ;;  %p16_p13 = scmp.ge.s32.totalorder %s932_s15, 4   ;;  %s1258_s9 = smov %s876_s10 }
 0x185   : > { %s1259_s10 = smov %s880_s11  ;;  %s1260_s11 = smov %s944_s18 }
 0x186   : > { %s1261_s12 = smov %s932_s15  ;;  %18 = sbr.rel (!%p16_p13) target bundleno = 6 (0x6), region = 78 }
 0x18d   :  { %486 = vsyncpa [#allocation3], 1 }
 0x18e   :  { %488 = vsyncpa [#allocation3 + $0x1], 1 }
 0x18f   :  { %489 = vsyncpa [#allocation6], 1 }
 0x190   :  { %491 = vsyncpa [#allocation6 + $0x1], 1 }
 0x191   :  { %492 = vsyncpa [#allocation4], 1 }
 0x192   :  { %494 = vsyncpa [#allocation4 + $0x1], 1 }

</bundles_post_ra>
